<compile_context>
chip_gen: v5e
topology: v5e:2x2
jax: 0.10.0
libtpu: 0.0.40
codegen_flags: <defaults>
</compile_context>

<pallas_src>
import functools

import jax
import jax.numpy as jnp
import numpy as np
from jax import lax
from jax.experimental import pallas as pl
from jax.experimental.pallas import tpu as pltpu


# --------------------------------------------------------------------------- #
# Fused Pallas kernel: conv7x7/s2 (as 7 matmuls) + BN shift + ReLU + maxpool3x3/s2
# --------------------------------------------------------------------------- #
def _fused_stem_kernel(rp4_ref, wk_ref, shift_ref, o_ref, *, TP, Wc, Wp, KWC, C_out):
    # rp4_ref  : (1, 4, Hq*Wc, KWC) bf16  row-phase-split width-im2col of one image
    #            (columns regrouped [even conv cols | odd conv cols])
    # wk_ref   : (7, KWC, C_out)    bf16  per-kh weight, BN scale folded in
    # shift_ref: (1, C_out)         f32   folded BN shift
    # o_ref    : (1, TP, Wp, C_out) f32   pooled output rows of this tile
    t = pl.program_id(1)
    m0 = t * TP                 # first pooled row of this tile
    rows_e = TP + 1             # even "extended" conv rows needed (2m)
    rows_o = TP                 # odd  "extended" conv rows needed (2m+1)

    acc_e = None
    acc_o = None
    for kh in range(7):
        w_kh = wk_ref[kh]                                   # (KWC, C_out) bf16
        # even extended rows 2m, m in [m0, m0+TP]  ->  rpp row 4m + kh
        qe, de = kh % 4, kh // 4
        se = pl.multiple_of((m0 + de) * Wc, 8)
        pe = rp4_ref[0, qe, pl.ds(se, rows_e * Wc), :]      # (rows_e*Wc, KWC)
        ye = jnp.dot(pe, w_kh, preferred_element_type=jnp.float32)
        # odd extended rows 2m+1, m in [m0, m0+TP)  ->  rpp row 4m + 2 + kh
        qo, do_ = (kh + 2) % 4, (kh + 2) // 4
        so = pl.multiple_of((m0 + do_) * Wc, 8)
        po = rp4_ref[0, qo, pl.ds(so, rows_o * Wc), :]      # (rows_o*Wc, KWC)
        yo = jnp.dot(po, w_kh, preferred_element_type=jnp.float32)
        acc_e = ye if acc_e is None else acc_e + ye
        acc_o = yo if acc_o is None else acc_o + yo

    shift = shift_ref[...]                                  # (1, C_out)
    ye = jnp.maximum(acc_e + shift, 0.0)                    # (rows_e*Wc, C_out)
    yo = jnp.maximum(acc_o + shift, 0.0)                    # (rows_o*Wc, C_out)

    # Extended conv row 0 (only present in tile 0) is the maxpool's top padding
    # row; post-ReLU every real value is >= 0, so masking it to 0 == -inf pad.
    r_ids = lax.broadcasted_iota(jnp.int32, (rows_e * Wc, C_out), 0)
    ye = jnp.where(jnp.logical_and(r_ids < Wc, t == 0), 0.0, ye)

    ye = ye.reshape(rows_e, Wc, C_out)
    yo = yo.reshape(rows_o, Wc, C_out)

    # Row direction of the 3x3/s2 pool: pooled row r = max(even r, odd r, even r+1)
    rmax = jnp.maximum(jnp.maximum(ye[:TP], ye[1:TP + 1]), yo)   # (TP, Wc, C_out)

    # Column direction (columns stored [even | odd]):
    #   pooled col j = max(conv col 2j, conv col 2j+1, conv col 2j-1)
    ce = rmax[:, :Wp, :]                  # conv col 2j
    co = rmax[:, Wp:, :]                  # conv col 2j+1
    cp = rmax[:, Wp - 1:Wc - 1, :]        # conv col 2j-1 for j>=1 (j=0 masked)
    c_ids = lax.broadcasted_iota(jnp.int32, (TP, Wp, C_out), 1)
    cp = jnp.where(c_ids == 0, 0.0, cp)   # pool's left padding column (== -inf)
    o_ref[0] = jnp.maximum(jnp.maximum(ce, co), cp)


# --------------------------------------------------------------------------- #
# Wrapper: layout prep (cheap, non-amplifying) + pallas_call
# --------------------------------------------------------------------------- #
def _pick_tp(hp, wc):
    """Pooled rows per tile: divisor of hp, modest conv tile, >=2 tiles if possible."""
    divs = [d for d in range(1, hp + 1) if hp % d == 0]
    cands = [d for d in divs if (hp // d) >= 2 and 2 * d * wc <= 4096]
    if not cands:
        cands = [d for d in divs if 2 * d * wc <= 4096] or [1]
    return max(cands)


def resnet_extractor_layer1(x_nchw, params):
    """ResNetExtractor(submodule=resnet, extracted_layer=1).forward(x) in NCHW."""
    N, C_in, H, W = x_nchw.shape
    C_out = params["conv_w"].shape[0]
    assert H % 4 == 0 and W % 16 == 0, "need H % 4 == 0 and W % 16 == 0"
    Hc, Wc = H // 2, W // 2            # conv output spatial dims
    Hp, Wp = Hc // 2, Wc // 2          # pooled output spatial dims
    KWC = 7 * C_in
    eps = 1e-5

    # ---- fold eval-mode BN: scale into the conv weight, shift kept separate ----
    scale = params["gamma"] / jnp.sqrt(params["var"] + eps)            # (C_out,)
    shift = (params["beta"] - params["mean"] * scale).reshape(1, C_out)
    shift = shift.astype(jnp.float32)
    w = params["conv_w"].astype(jnp.float32) * scale[:, None, None, None]
    # (C_out, C_in, kh, kw) -> (kh, kw, C_in, C_out) -> (7, 7*C_in, C_out)
    wk = jnp.transpose(w, (2, 3, 1, 0)).reshape(7, KWC, C_out).astype(jnp.bfloat16)

    # ---- width-direction im2col (stride 2, k=7); ~3.5x input, not 12x ----
    x = jnp.transpose(x_nchw, (0, 2, 3, 1)).astype(jnp.float32)        # NHWC
    xp = jnp.pad(x, ((0, 0), (3, 3), (3, 3), (0, 0)))                  # conv zero-pad
    taps = [
        lax.slice(xp, (0, 0, kw, 0),
                  (N, H + 6, kw + 2 * (Wc - 1) + 1, C_in), (1, 1, 2, 1))
        for kw in range(7)
    ]                                                   # each (N, H+6, Wc, C_in)
    rp = jnp.stack(taps, axis=3).reshape(N, H + 6, Wc, KWC)
    # regroup conv output columns as [even | odd] so the pool needs no strided reads
    rp = jnp.concatenate([rp[:, :, 0::2, :], rp[:, :, 1::2, :]], axis=2)
    # 2 leading zero rows => "extended conv row" ei uses rp rows 2*ei + kh;
    # then pad to a multiple of 4 rows and split into 4 row phases so every
    # in-kernel read is a contiguous slice.
    Hr = H + 8
    Hr4 = Hr + (-Hr) % 4
    Hq = Hr4 // 4
    rp = jnp.pad(rp, ((0, 0), (2, Hr4 - Hr), (0, 0), (0, 0)))
    rp4 = rp.reshape(N, Hq, 4, Wc, KWC).transpose(0, 2, 1, 3, 4)
    rp4 = rp4.reshape(N, 4, Hq * Wc, KWC).astype(jnp.bfloat16)

    TP = _pick_tp(Hp, Wc)
    T = Hp // TP

    kernel = functools.partial(_fused_stem_kernel, TP=TP, Wc=Wc, Wp=Wp,
                               KWC=KWC, C_out=C_out)
    out = pl.pallas_call(
        kernel,
        out_shape=jax.ShapeDtypeStruct((N, Hp, Wp, C_out), jnp.float32),
        grid=(N, T),
        in_specs=[
            # whole per-image row-patch block; index_map ignores t so it is only
            # re-DMA'd when the batch index changes and stays resident across tiles
            pl.BlockSpec((1, 4, Hq * Wc, KWC), lambda n, t: (n, 0, 0, 0)),
            pl.BlockSpec((7, KWC, C_out), lambda n, t: (0, 0, 0)),
            pl.BlockSpec((1, C_out), lambda n, t: (0, 0)),
        ],
        out_specs=pl.BlockSpec((1, TP, Wp, C_out), lambda n, t: (n, t, 0, 0)),
        compiler_params=pltpu.CompilerParams(
            dimension_semantics=("parallel", "parallel")),
    )(rp4, wk, shift)
    return jnp.transpose(out, (0, 3, 1, 2))                 # NHWC -> NCHW


# --------------------------------------------------------------------------- #
# Plain-JAX reference (correctness check only)
# --------------------------------------------------------------------------- #
def _reference(x_nchw, params):
    x = jnp.transpose(x_nchw, (0, 2, 3, 1))
    w = jnp.transpose(params["conv_w"], (2, 3, 1, 0))       # HWIO
    y = lax.conv_general_dilated(
        x, w, window_strides=(2, 2), padding=((3, 3), (3, 3)),
        dimension_numbers=("NHWC", "HWIO", "NHWC"))
    eps = 1e-5
    scale = params["gamma"] / jnp.sqrt(params["var"] + eps)
    shift = params["beta"] - params["mean"] * scale
    y = jnp.maximum(y * scale + shift, 0.0)
    neg = jnp.finfo(y.dtype).min
    y = lax.reduce_window(y, neg, lax.max, (1, 3, 3, 1), (1, 2, 2, 1),
                          [(0, 0), (1, 1), (1, 1), (0, 0)])
    return jnp.transpose(y, (0, 3, 1, 2))


# --------------------------------------------------------------------------- #
if __name__ == "__main__":
    key = jax.random.PRNGKey(0)
    k1, k2, k3, k4, k5, k6 = jax.random.split(key, 6)

    # Small shapes consistent with the stem: N=2, C_in=3, 32x32 input,
    # C_out=16 (scaled-down stand-in for ResNet's 64 stem channels).
    N, C_in, H, W = 2, 3, 32, 32
    C_out = 16

    x = jax.random.normal(k1, (N, C_in, H, W), jnp.float32)
    params = {
        "conv_w": 0.1 * jax.random.normal(k2, (C_out, C_in, 7, 7), jnp.float32),
        "gamma": jax.random.uniform(k3, (C_out,), jnp.float32, 0.5, 1.5),
        "beta": 0.1 * jax.random.normal(k4, (C_out,), jnp.float32),
        "mean": 0.1 * jax.random.normal(k5, (C_out,), jnp.float32),
        "var": jax.random.uniform(k6, (C_out,), jnp.float32, 0.5, 1.5),
    }

    out = jax.jit(resnet_extractor_layer1)(x, params)
    out = jax.block_until_ready(out)

    assert out.shape == (N, C_out, 8, 8), out.shape
    ref = _reference(x, params)
    # bf16 matmul operands (per the perf review) -> loosened tolerance
    np.testing.assert_allclose(np.asarray(out), np.asarray(ref),
                               rtol=2e-2, atol=3e-2)
    print("KERNEL_OK")
</pallas_src>

<mosaic_0001>
module attributes {stable_mosaic.version = 11 : i64} {
  func.func @_fused_stem_kernel(%arg0: i32, %arg1: i32, %arg2: memref<1x4x160x21xbf16, #tpu.memory_space<vmem>>, %arg3: memref<7x21x16xbf16, #tpu.memory_space<vmem>>, %arg4: memref<1x16xf32, #tpu.memory_space<vmem>>, %arg5: memref<1x4x8x16xf32, #tpu.memory_space<vmem>>) attributes {dimension_semantics = [#tpu.dimension_semantics<parallel>, #tpu.dimension_semantics<parallel>], iteration_bounds = array<i64: 2, 2>, scalar_prefetch = 0 : i64, scratch_operands = 0 : i64, tpu.core_type = #tpu.core_type<tc>, window_params = [{transform_indices = @transform_0, window_bounds = array<i64: 1, 4, 160, 21>}, {pipeline_mode = #tpu.pipeline_mode<synchronous>, transform_indices = @transform_1, window_bounds = array<i64: 7, 21, 16>}, {pipeline_mode = #tpu.pipeline_mode<synchronous>, transform_indices = @transform_2, window_bounds = array<i64: 1, 16>}, {transform_indices = @transform_3, window_bounds = array<i64: 1, 4, 8, 16>}]} {
    %c4_i32 = arith.constant 4 : i32
    %0 = arith.muli %arg1, %c4_i32 : i32
    %c0 = arith.constant 0 : index
    %c0_0 = arith.constant 0 : index
    %c0_1 = arith.constant 0 : index
    %1 = vector.load %arg3[%c0, %c0_0, %c0_1] : memref<7x21x16xbf16, #tpu.memory_space<vmem>>, vector<1x21x16xbf16>
    %2 = vector.shape_cast %1 : vector<1x21x16xbf16> to vector<21x16xbf16>
    %c0_i32 = arith.constant 0 : i32
    %3 = arith.addi %0, %c0_i32 : i32
    %c16_i32 = arith.constant 16 : i32
    %4 = arith.muli %3, %c16_i32 : i32
    %5 = tpu.assume_multiple %4, 8 : i32
    %c0_2 = arith.constant 0 : index
    %c0_3 = arith.constant 0 : index
    %6 = arith.index_cast %5 : i32 to index
    %c0_4 = arith.constant 0 : index
    %7 = vector.load %arg2[%c0_2, %c0_3, %6, %c0_4] : memref<1x4x160x21xbf16, #tpu.memory_space<vmem>>, vector<1x1x80x21xbf16>
    %8 = vector.shape_cast %7 : vector<1x1x80x21xbf16> to vector<80x21xbf16>
    %cst = arith.constant dense<0.000000e+00> : vector<80x16xf32>
    %9 = tpu.matmul %8, %2, %cst {dimension_numbers = #tpu.dot_dimension_numbers<[1], [0], [0], [1], [0, 0, 1, 1], [], []>} : vector<80x21xbf16>, vector<21x16xbf16>, vector<80x16xf32> -> vector<80x16xf32>
    %c0_i32_5 = arith.constant 0 : i32
    %10 = arith.addi %0, %c0_i32_5 : i32
    %c16_i32_6 = arith.constant 16 : i32
    %11 = arith.muli %10, %c16_i32_6 : i32
    %12 = tpu.assume_multiple %11, 8 : i32
    %c0_7 = arith.constant 0 : index
    %c2 = arith.constant 2 : index
    %13 = arith.index_cast %12 : i32 to index
    %c0_8 = arith.constant 0 : index
    %14 = vector.load %arg2[%c0_7, %c2, %13, %c0_8] : memref<1x4x160x21xbf16, #tpu.memory_space<vmem>>, vector<1x1x64x21xbf16>
    %15 = vector.shape_cast %14 : vector<1x1x64x21xbf16> to vector<64x21xbf16>
    %cst_9 = arith.constant dense<0.000000e+00> : vector<64x16xf32>
    %16 = tpu.matmul %15, %2, %cst_9 {dimension_numbers = #tpu.dot_dimension_numbers<[1], [0], [0], [1], [0, 0, 1, 1], [], []>} : vector<64x21xbf16>, vector<21x16xbf16>, vector<64x16xf32> -> vector<64x16xf32>
    %c1 = arith.constant 1 : index
    %c0_10 = arith.constant 0 : index
    %c0_11 = arith.constant 0 : index
    %17 = vector.load %arg3[%c1, %c0_10, %c0_11] : memref<7x21x16xbf16, #tpu.memory_space<vmem>>, vector<1x21x16xbf16>
    %18 = vector.shape_cast %17 : vector<1x21x16xbf16> to vector<21x16xbf16>
    %c0_i32_12 = arith.constant 0 : i32
    %19 = arith.addi %0, %c0_i32_12 : i32
    %c16_i32_13 = arith.constant 16 : i32
    %20 = arith.muli %19, %c16_i32_13 : i32
    %21 = tpu.assume_multiple %20, 8 : i32
    %c0_14 = arith.constant 0 : index
    %c1_15 = arith.constant 1 : index
    %22 = arith.index_cast %21 : i32 to index
    %c0_16 = arith.constant 0 : index
    %23 = vector.load %arg2[%c0_14, %c1_15, %22, %c0_16] : memref<1x4x160x21xbf16, #tpu.memory_space<vmem>>, vector<1x1x80x21xbf16>
    %24 = vector.shape_cast %23 : vector<1x1x80x21xbf16> to vector<80x21xbf16>
    %cst_17 = arith.constant dense<0.000000e+00> : vector<80x16xf32>
    %25 = tpu.matmul %24, %18, %cst_17 {dimension_numbers = #tpu.dot_dimension_numbers<[1], [0], [0], [1], [0, 0, 1, 1], [], []>} : vector<80x21xbf16>, vector<21x16xbf16>, vector<80x16xf32> -> vector<80x16xf32>
    %c0_i32_18 = arith.constant 0 : i32
    %26 = arith.addi %0, %c0_i32_18 : i32
    %c16_i32_19 = arith.constant 16 : i32
    %27 = arith.muli %26, %c16_i32_19 : i32
    %28 = tpu.assume_multiple %27, 8 : i32
    %c0_20 = arith.constant 0 : index
    %c3 = arith.constant 3 : index
    %29 = arith.index_cast %28 : i32 to index
    %c0_21 = arith.constant 0 : index
    %30 = vector.load %arg2[%c0_20, %c3, %29, %c0_21] : memref<1x4x160x21xbf16, #tpu.memory_space<vmem>>, vector<1x1x64x21xbf16>
    %31 = vector.shape_cast %30 : vector<1x1x64x21xbf16> to vector<64x21xbf16>
    %cst_22 = arith.constant dense<0.000000e+00> : vector<64x16xf32>
    %32 = tpu.matmul %31, %18, %cst_22 {dimension_numbers = #tpu.dot_dimension_numbers<[1], [0], [0], [1], [0, 0, 1, 1], [], []>} : vector<64x21xbf16>, vector<21x16xbf16>, vector<64x16xf32> -> vector<64x16xf32>
    %33 = arith.addf %9, %25 : vector<80x16xf32>
    %34 = arith.addf %16, %32 : vector<64x16xf32>
    %c2_23 = arith.constant 2 : index
    %c0_24 = arith.constant 0 : index
    %c0_25 = arith.constant 0 : index
    %35 = vector.load %arg3[%c2_23, %c0_24, %c0_25] : memref<7x21x16xbf16, #tpu.memory_space<vmem>>, vector<1x21x16xbf16>
    %36 = vector.shape_cast %35 : vector<1x21x16xbf16> to vector<21x16xbf16>
    %c0_i32_26 = arith.constant 0 : i32
    %37 = arith.addi %0, %c0_i32_26 : i32
    %c16_i32_27 = arith.constant 16 : i32
    %38 = arith.muli %37, %c16_i32_27 : i32
    %39 = tpu.assume_multiple %38, 8 : i32
    %c0_28 = arith.constant 0 : index
    %c2_29 = arith.constant 2 : index
    %40 = arith.index_cast %39 : i32 to index
    %c0_30 = arith.constant 0 : index
    %41 = vector.load %arg2[%c0_28, %c2_29, %40, %c0_30] : memref<1x4x160x21xbf16, #tpu.memory_space<vmem>>, vector<1x1x80x21xbf16>
    %42 = vector.shape_cast %41 : vector<1x1x80x21xbf16> to vector<80x21xbf16>
    %cst_31 = arith.constant dense<0.000000e+00> : vector<80x16xf32>
    %43 = tpu.matmul %42, %36, %cst_31 {dimension_numbers = #tpu.dot_dimension_numbers<[1], [0], [0], [1], [0, 0, 1, 1], [], []>} : vector<80x21xbf16>, vector<21x16xbf16>, vector<80x16xf32> -> vector<80x16xf32>
    %c1_i32 = arith.constant 1 : i32
    %44 = arith.addi %0, %c1_i32 : i32
    %c16_i32_32 = arith.constant 16 : i32
    %45 = arith.muli %44, %c16_i32_32 : i32
    %46 = tpu.assume_multiple %45, 8 : i32
    %c0_33 = arith.constant 0 : index
    %c0_34 = arith.constant 0 : index
    %47 = arith.index_cast %46 : i32 to index
    %c0_35 = arith.constant 0 : index
    %48 = vector.load %arg2[%c0_33, %c0_34, %47, %c0_35] : memref<1x4x160x21xbf16, #tpu.memory_space<vmem>>, vector<1x1x64x21xbf16>
    %49 = vector.shape_cast %48 : vector<1x1x64x21xbf16> to vector<64x21xbf16>
    %cst_36 = arith.constant dense<0.000000e+00> : vector<64x16xf32>
    %50 = tpu.matmul %49, %36, %cst_36 {dimension_numbers = #tpu.dot_dimension_numbers<[1], [0], [0], [1], [0, 0, 1, 1], [], []>} : vector<64x21xbf16>, vector<21x16xbf16>, vector<64x16xf32> -> vector<64x16xf32>
    %51 = arith.addf %33, %43 : vector<80x16xf32>
    %52 = arith.addf %34, %50 : vector<64x16xf32>
    %c3_37 = arith.constant 3 : index
    %c0_38 = arith.constant 0 : index
    %c0_39 = arith.constant 0 : index
    %53 = vector.load %arg3[%c3_37, %c0_38, %c0_39] : memref<7x21x16xbf16, #tpu.memory_space<vmem>>, vector<1x21x16xbf16>
    %54 = vector.shape_cast %53 : vector<1x21x16xbf16> to vector<21x16xbf16>
    %c0_i32_40 = arith.constant 0 : i32
    %55 = arith.addi %0, %c0_i32_40 : i32
    %c16_i32_41 = arith.constant 16 : i32
    %56 = arith.muli %55, %c16_i32_41 : i32
    %57 = tpu.assume_multiple %56, 8 : i32
    %c0_42 = arith.constant 0 : index
    %c3_43 = arith.constant 3 : index
    %58 = arith.index_cast %57 : i32 to index
    %c0_44 = arith.constant 0 : index
    %59 = vector.load %arg2[%c0_42, %c3_43, %58, %c0_44] : memref<1x4x160x21xbf16, #tpu.memory_space<vmem>>, vector<1x1x80x21xbf16>
    %60 = vector.shape_cast %59 : vector<1x1x80x21xbf16> to vector<80x21xbf16>
    %cst_45 = arith.constant dense<0.000000e+00> : vector<80x16xf32>
    %61 = tpu.matmul %60, %54, %cst_45 {dimension_numbers = #tpu.dot_dimension_numbers<[1], [0], [0], [1], [0, 0, 1, 1], [], []>} : vector<80x21xbf16>, vector<21x16xbf16>, vector<80x16xf32> -> vector<80x16xf32>
    %c1_i32_46 = arith.constant 1 : i32
    %62 = arith.addi %0, %c1_i32_46 : i32
    %c16_i32_47 = arith.constant 16 : i32
    %63 = arith.muli %62, %c16_i32_47 : i32
    %64 = tpu.assume_multiple %63, 8 : i32
    %c0_48 = arith.constant 0 : index
    %c1_49 = arith.constant 1 : index
    %65 = arith.index_cast %64 : i32 to index
    %c0_50 = arith.constant 0 : index
    %66 = vector.load %arg2[%c0_48, %c1_49, %65, %c0_50] : memref<1x4x160x21xbf16, #tpu.memory_space<vmem>>, vector<1x1x64x21xbf16>
    %67 = vector.shape_cast %66 : vector<1x1x64x21xbf16> to vector<64x21xbf16>
    %cst_51 = arith.constant dense<0.000000e+00> : vector<64x16xf32>
    %68 = tpu.matmul %67, %54, %cst_51 {dimension_numbers = #tpu.dot_dimension_numbers<[1], [0], [0], [1], [0, 0, 1, 1], [], []>} : vector<64x21xbf16>, vector<21x16xbf16>, vector<64x16xf32> -> vector<64x16xf32>
    %69 = arith.addf %51, %61 : vector<80x16xf32>
    %70 = arith.addf %52, %68 : vector<64x16xf32>
    %c4 = arith.constant 4 : index
    %c0_52 = arith.constant 0 : index
    %c0_53 = arith.constant 0 : index
    %71 = vector.load %arg3[%c4, %c0_52, %c0_53] : memref<7x21x16xbf16, #tpu.memory_space<vmem>>, vector<1x21x16xbf16>
    %72 = vector.shape_cast %71 : vector<1x21x16xbf16> to vector<21x16xbf16>
    %c1_i32_54 = arith.constant 1 : i32
    %73 = arith.addi %0, %c1_i32_54 : i32
    %c16_i32_55 = arith.constant 16 : i32
    %74 = arith.muli %73, %c16_i32_55 : i32
    %75 = tpu.assume_multiple %74, 8 : i32
    %c0_56 = arith.constant 0 : index
    %c0_57 = arith.constant 0 : index
    %76 = arith.index_cast %75 : i32 to index
    %c0_58 = arith.constant 0 : index
    %77 = vector.load %arg2[%c0_56, %c0_57, %76, %c0_58] : memref<1x4x160x21xbf16, #tpu.memory_space<vmem>>, vector<1x1x80x21xbf16>
    %78 = vector.shape_cast %77 : vector<1x1x80x21xbf16> to vector<80x21xbf16>
    %cst_59 = arith.constant dense<0.000000e+00> : vector<80x16xf32>
    %79 = tpu.matmul %78, %72, %cst_59 {dimension_numbers = #tpu.dot_dimension_numbers<[1], [0], [0], [1], [0, 0, 1, 1], [], []>} : vector<80x21xbf16>, vector<21x16xbf16>, vector<80x16xf32> -> vector<80x16xf32>
    %c1_i32_60 = arith.constant 1 : i32
    %80 = arith.addi %0, %c1_i32_60 : i32
    %c16_i32_61 = arith.constant 16 : i32
    %81 = arith.muli %80, %c16_i32_61 : i32
    %82 = tpu.assume_multiple %81, 8 : i32
    %c0_62 = arith.constant 0 : index
    %c2_63 = arith.constant 2 : index
    %83 = arith.index_cast %82 : i32 to index
    %c0_64 = arith.constant 0 : index
    %84 = vector.load %arg2[%c0_62, %c2_63, %83, %c0_64] : memref<1x4x160x21xbf16, #tpu.memory_space<vmem>>, vector<1x1x64x21xbf16>
    %85 = vector.shape_cast %84 : vector<1x1x64x21xbf16> to vector<64x21xbf16>
    %cst_65 = arith.constant dense<0.000000e+00> : vector<64x16xf32>
    %86 = tpu.matmul %85, %72, %cst_65 {dimension_numbers = #tpu.dot_dimension_numbers<[1], [0], [0], [1], [0, 0, 1, 1], [], []>} : vector<64x21xbf16>, vector<21x16xbf16>, vector<64x16xf32> -> vector<64x16xf32>
    %87 = arith.addf %69, %79 : vector<80x16xf32>
    %88 = arith.addf %70, %86 : vector<64x16xf32>
    %c5 = arith.constant 5 : index
    %c0_66 = arith.constant 0 : index
    %c0_67 = arith.constant 0 : index
    %89 = vector.load %arg3[%c5, %c0_66, %c0_67] : memref<7x21x16xbf16, #tpu.memory_space<vmem>>, vector<1x21x16xbf16>
    %90 = vector.shape_cast %89 : vector<1x21x16xbf16> to vector<21x16xbf16>
    %c1_i32_68 = arith.constant 1 : i32
    %91 = arith.addi %0, %c1_i32_68 : i32
    %c16_i32_69 = arith.constant 16 : i32
    %92 = arith.muli %91, %c16_i32_69 : i32
    %93 = tpu.assume_multiple %92, 8 : i32
    %c0_70 = arith.constant 0 : index
    %c1_71 = arith.constant 1 : index
    %94 = arith.index_cast %93 : i32 to index
    %c0_72 = arith.constant 0 : index
    %95 = vector.load %arg2[%c0_70, %c1_71, %94, %c0_72] : memref<1x4x160x21xbf16, #tpu.memory_space<vmem>>, vector<1x1x80x21xbf16>
    %96 = vector.shape_cast %95 : vector<1x1x80x21xbf16> to vector<80x21xbf16>
    %cst_73 = arith.constant dense<0.000000e+00> : vector<80x16xf32>
    %97 = tpu.matmul %96, %90, %cst_73 {dimension_numbers = #tpu.dot_dimension_numbers<[1], [0], [0], [1], [0, 0, 1, 1], [], []>} : vector<80x21xbf16>, vector<21x16xbf16>, vector<80x16xf32> -> vector<80x16xf32>
    %c1_i32_74 = arith.constant 1 : i32
    %98 = arith.addi %0, %c1_i32_74 : i32
    %c16_i32_75 = arith.constant 16 : i32
    %99 = arith.muli %98, %c16_i32_75 : i32
    %100 = tpu.assume_multiple %99, 8 : i32
    %c0_76 = arith.constant 0 : index
    %c3_77 = arith.constant 3 : index
    %101 = arith.index_cast %100 : i32 to index
    %c0_78 = arith.constant 0 : index
    %102 = vector.load %arg2[%c0_76, %c3_77, %101, %c0_78] : memref<1x4x160x21xbf16, #tpu.memory_space<vmem>>, vector<1x1x64x21xbf16>
    %103 = vector.shape_cast %102 : vector<1x1x64x21xbf16> to vector<64x21xbf16>
    %cst_79 = arith.constant dense<0.000000e+00> : vector<64x16xf32>
    %104 = tpu.matmul %103, %90, %cst_79 {dimension_numbers = #tpu.dot_dimension_numbers<[1], [0], [0], [1], [0, 0, 1, 1], [], []>} : vector<64x21xbf16>, vector<21x16xbf16>, vector<64x16xf32> -> vector<64x16xf32>
    %105 = arith.addf %87, %97 : vector<80x16xf32>
    %106 = arith.addf %88, %104 : vector<64x16xf32>
    %c6 = arith.constant 6 : index
    %c0_80 = arith.constant 0 : index
    %c0_81 = arith.constant 0 : index
    %107 = vector.load %arg3[%c6, %c0_80, %c0_81] : memref<7x21x16xbf16, #tpu.memory_space<vmem>>, vector<1x21x16xbf16>
    %108 = vector.shape_cast %107 : vector<1x21x16xbf16> to vector<21x16xbf16>
    %c1_i32_82 = arith.constant 1 : i32
    %109 = arith.addi %0, %c1_i32_82 : i32
    %c16_i32_83 = arith.constant 16 : i32
    %110 = arith.muli %109, %c16_i32_83 : i32
    %111 = tpu.assume_multiple %110, 8 : i32
    %c0_84 = arith.constant 0 : index
    %c2_85 = arith.constant 2 : index
    %112 = arith.index_cast %111 : i32 to index
    %c0_86 = arith.constant 0 : index
    %113 = vector.load %arg2[%c0_84, %c2_85, %112, %c0_86] : memref<1x4x160x21xbf16, #tpu.memory_space<vmem>>, vector<1x1x80x21xbf16>
    %114 = vector.shape_cast %113 : vector<1x1x80x21xbf16> to vector<80x21xbf16>
    %cst_87 = arith.constant dense<0.000000e+00> : vector<80x16xf32>
    %115 = tpu.matmul %114, %108, %cst_87 {dimension_numbers = #tpu.dot_dimension_numbers<[1], [0], [0], [1], [0, 0, 1, 1], [], []>} : vector<80x21xbf16>, vector<21x16xbf16>, vector<80x16xf32> -> vector<80x16xf32>
    %c2_i32 = arith.constant 2 : i32
    %116 = arith.addi %0, %c2_i32 : i32
    %c16_i32_88 = arith.constant 16 : i32
    %117 = arith.muli %116, %c16_i32_88 : i32
    %118 = tpu.assume_multiple %117, 8 : i32
    %c0_89 = arith.constant 0 : index
    %c0_90 = arith.constant 0 : index
    %119 = arith.index_cast %118 : i32 to index
    %c0_91 = arith.constant 0 : index
    %120 = vector.load %arg2[%c0_89, %c0_90, %119, %c0_91] : memref<1x4x160x21xbf16, #tpu.memory_space<vmem>>, vector<1x1x64x21xbf16>
    %121 = vector.shape_cast %120 : vector<1x1x64x21xbf16> to vector<64x21xbf16>
    %cst_92 = arith.constant dense<0.000000e+00> : vector<64x16xf32>
    %122 = tpu.matmul %121, %108, %cst_92 {dimension_numbers = #tpu.dot_dimension_numbers<[1], [0], [0], [1], [0, 0, 1, 1], [], []>} : vector<64x21xbf16>, vector<21x16xbf16>, vector<64x16xf32> -> vector<64x16xf32>
    %123 = arith.addf %105, %115 : vector<80x16xf32>
    %124 = arith.addf %106, %122 : vector<64x16xf32>
    %c0_93 = arith.constant 0 : index
    %c0_94 = arith.constant 0 : index
    %125 = vector.load %arg4[%c0_93, %c0_94] : memref<1x16xf32, #tpu.memory_space<vmem>>, vector<1x16xf32>
    %126 = vector.broadcast %125 : vector<1x16xf32> to vector<80x16xf32>
    %127 = arith.addf %123, %126 : vector<80x16xf32>
    %cst_95 = arith.constant 0.000000e+00 : f32
    %128 = vector.broadcast %cst_95 : f32 to vector<80x16xf32>
    %129 = arith.maximumf %127, %128 : vector<80x16xf32>
    %130 = vector.broadcast %125 : vector<1x16xf32> to vector<64x16xf32>
    %131 = arith.addf %124, %130 : vector<64x16xf32>
    %cst_96 = arith.constant 0.000000e+00 : f32
    %132 = vector.broadcast %cst_96 : f32 to vector<64x16xf32>
    %133 = arith.maximumf %131, %132 : vector<64x16xf32>
    %134 = tpu.iota {dimensions = array<i32: 0>} : vector<80x16xi32>
    %c16_i32_97 = arith.constant 16 : i32
    %135 = vector.broadcast %c16_i32_97 : i32 to vector<80x16xi32>
    %136 = arith.cmpi slt, %134, %135 : vector<80x16xi32>
    %c0_i32_98 = arith.constant 0 : i32
    %137 = arith.cmpi eq, %arg1, %c0_i32_98 : i32
    %138 = vector.broadcast %137 : i1 to vector<80x16xi1>
    %139 = arith.andi %136, %138 : vector<80x16xi1>
    %cst_99 = arith.constant 0.000000e+00 : f32
    %140 = vector.broadcast %cst_99 : f32 to vector<80x16xf32>
    %141 = arith.select %139, %140, %129 : vector<80x16xi1>, vector<80x16xf32>
    %142 = vector.shape_cast %141 : vector<80x16xf32> to vector<5x16x16xf32>
    %143 = vector.shape_cast %133 : vector<64x16xf32> to vector<4x16x16xf32>
    %144 = vector.extract_strided_slice %142 {offsets = [0, 0, 0], sizes = [4, 16, 16], strides = [1, 1, 1]} : vector<5x16x16xf32> to vector<4x16x16xf32>
    %145 = vector.extract_strided_slice %142 {offsets = [1, 0, 0], sizes = [4, 16, 16], strides = [1, 1, 1]} : vector<5x16x16xf32> to vector<4x16x16xf32>
    %146 = arith.maximumf %144, %145 : vector<4x16x16xf32>
    %147 = arith.maximumf %146, %143 : vector<4x16x16xf32>
    %148 = vector.extract_strided_slice %147 {offsets = [0, 0, 0], sizes = [4, 8, 16], strides = [1, 1, 1]} : vector<4x16x16xf32> to vector<4x8x16xf32>
    %149 = vector.extract_strided_slice %147 {offsets = [0, 8, 0], sizes = [4, 8, 16], strides = [1, 1, 1]} : vector<4x16x16xf32> to vector<4x8x16xf32>
    %150 = vector.extract_strided_slice %147 {offsets = [0, 7, 0], sizes = [4, 8, 16], strides = [1, 1, 1]} : vector<4x16x16xf32> to vector<4x8x16xf32>
    %151 = tpu.iota {dimensions = array<i32: 1>} : vector<4x8x16xi32>
    %c0_i32_100 = arith.constant 0 : i32
    %152 = vector.broadcast %c0_i32_100 : i32 to vector<4x8x16xi32>
    %153 = arith.cmpi eq, %151, %152 : vector<4x8x16xi32>
    %cst_101 = arith.constant 0.000000e+00 : f32
    %154 = vector.broadcast %cst_101 : f32 to vector<4x8x16xf32>
    %155 = arith.select %153, %154, %150 : vector<4x8x16xi1>, vector<4x8x16xf32>
    %156 = arith.maximumf %148, %149 : vector<4x8x16xf32>
    %157 = arith.maximumf %156, %155 : vector<4x8x16xf32>
    %c0_102 = arith.constant 0 : index
    %c0_103 = arith.constant 0 : index
    %c0_104 = arith.constant 0 : index
    %c0_105 = arith.constant 0 : index
    %158 = vector.load %arg5[%c0_102, %c0_103, %c0_104, %c0_105] : memref<1x4x8x16xf32, #tpu.memory_space<vmem>>, vector<1x4x8x16xf32>
    %159 = vector.shape_cast %158 : vector<1x4x8x16xf32> to vector<4x8x16xf32>
    %160 = vector.shape_cast %157 : vector<4x8x16xf32> to vector<1x4x8x16xf32>
    tpu.vector_store %arg5[%c0_102, %c0_103, %c0_104, %c0_105], %160 {strides = array<i32>} : memref<1x4x8x16xf32, #tpu.memory_space<vmem>>, vector<1x4x8x16xf32>,
    return
  }
  func.func @transform_0(%arg0: i32, %arg1: i32) -> (i32, i32, i32, i32) {
    %c0_i32 = arith.constant 0 : i32
    %c0_i32_0 = arith.constant 0 : i32
    %c0_i32_1 = arith.constant 0 : i32
    %c0_i32_2 = arith.constant 0 : i32
    return %arg0, %c0_i32, %c0_i32_0, %c0_i32_1 : i32, i32, i32, i32
  }
  func.func @transform_1(%arg0: i32, %arg1: i32) -> (i32, i32, i32) {
    %c0_i32 = arith.constant 0 : i32
    %c0_i32_0 = arith.constant 0 : i32
    %c0_i32_1 = arith.constant 0 : i32
    %c0_i32_2 = arith.constant 0 : i32
    return %c0_i32, %c0_i32_0, %c0_i32_1 : i32, i32, i32
  }
  func.func @transform_2(%arg0: i32, %arg1: i32) -> (i32, i32) {
    %c0_i32 = arith.constant 0 : i32
    %c0_i32_0 = arith.constant 0 : i32
    %c0_i32_1 = arith.constant 0 : i32
    return %c0_i32, %c0_i32_0 : i32, i32
  }
  func.func @transform_3(%arg0: i32, %arg1: i32) -> (i32, i32, i32, i32) {
    %c0_i32 = arith.constant 0 : i32
    %c0_i32_0 = arith.constant 0 : i32
    %c0_i32_1 = arith.constant 0 : i32
    return %arg0, %arg1, %c0_i32, %c0_i32_0 : i32, i32, i32, i32
  }
}

</mosaic_0001>

<bundles_post_ra>
// kernel: resnet_extractor_layer1.1
= control target key start
LH: loop header
LB: loop body
LE: loop exit
PB: predicated region body
PF: predicated region fallthrough
CT: control target
= control target key end

     0   :  { %8 = vsyncpa [#allocation3], 0  ;;  %s2990_s0 = inlined_call_operand.vmem [shape: bf16[2,4,160,21], index: 0, kind: input, shape index: {}]   ;;  %s2991_s1 = inlined_call_operand.vmem [shape: bf16[7,21,16], index: 1, kind: input, shape index: {}]   ;;  %s2992_s2 = inlined_call_operand.vmem [shape: f32[1,16], index: 2, kind: input, shape index: {}]   ;;  %s2993_s3 = inlined_call_operand.hbm [shape: f32[2,8,8,16], index: 3, kind: output, shape index: {}]  }
   0x1   :  { %10 = vsyncpa [#allocation3 + $0x1], 0  ;;  %s2512_s12 = smov 0   ;;  %s2514_s13 = smov 0  }
   0x2   :  { %s2516_s14 = smov 0   ;;  %s2518_s15 = smov 0  }
   0x3   :  { %s2520_s16 = smov 0   ;;  %s2522_s17 = smov 0  }
   0x4   :  { %s2524_s18 = smov 0   ;;  %s2526_s19 = smov 0  }
   0x5 LB: > { %s1760_s20 = sadd.s32 4294967295, %s2487_s19   ;;  %s1761_s21 = sadd.s32 4294967294, %s2487_s19   ;;  %s2487_s19 = sphi %s2526_s19, %s16_s19   ;;  %s2483_s18 = sphi %s2524_s18, %s3004_s18   ;;  %s2479_s17 = sphi %s2522_s17, %s3003_s17   ;;  %s2475_s16 = sphi %s2520_s16, %s3002_s16   ;;  %s2471_s15 = sphi %s2518_s15, %s3001_s15   ;;  %s2467_s14 = sphi %s2516_s14, %s3000_s14   ;;  %s2463_s13 = sphi %s2514_s13, %s2999_s13   ;;  %s2459_s12 = sphi %s2512_s12, %s2998_s12  }
   0x6   : > { %s25_s22 = sadd.s32 1, %s2479_s17  ;;  %s28_s23 = sadd.s32 1, %s2483_s18 }
   0x7   : > { %p26_p0 = scmp.ge.s32.totalorder %s25_s22, 2  ;;  %p115_p1 = scmp.ne.s32.totalorder %s2467_s14, %s2463_s13 }
   0x8   : > { %p116_p2 = scmp.eq.s32.totalorder %s1760_s20, 3  ;;  %p121_p5 = scmp.ne.s32.totalorder %s2463_s13, %s2459_s12 }
   0x9   : > { %s3006_s22 = smov (%p26_p0, %s25_s22), 0  ;;  %s3008_s23 = smov (!%p26_p0, %s28_s23), %s2483_s18 }
   0xa   : > { %s101_s24 = ssub.s32 %s2479_s17, %s3006_s22  ;;  %p2563_p3 = por %p116_p2, %p115_p1 }
   0xb   : > { %p30_p4 = scmp.ge.s32.totalorder %s3008_s23, 2  ;;  %p122_p6 = scmp.eq.s32.totalorder %s1761_s21, 3 }
   0xc   : > { %p1764_p7 = scmp.ge.s32.totalorder %s2487_s19, 1  ;;  %p154_p9 = scmp.lt.s32.totalorder %s2487_s19, 5 }
   0xd   : > { %s3010_s23 = smov (%p30_p4, %s3008_s23), 0  ;;  %p2572_p8 = por %p122_p6, %p121_p5 }
   0xe   : > { %s100_s27 = ssub.s32 %s2483_s18, %s3010_s23  ;;  %s105_s28 = sadd.s32 1, %s2467_s14 }
   0xf   : > { %s102_s29 = sor.u32 %s101_s24, %s100_s27  ;;  %p155_p10 = pnand %p1764_p7, %p154_p9 }
  0x10   : > { %p103_p11 = scmp.eq.s32.totalorder %s102_s29, 0  ;;  %p178_p12 = scmp.lt.s32.totalorder (!%p155_p10), %s2475_s16, 1 }
  0x11   : > { %158 = sbr.rel (%p155_p10) target bundleno = 437 (0x1b5), region = 32  ;;  %s2591_s8 = sshll.u32 (!%p155_p10), %s2471_s15, 6 }
  0x12   : > { %s2581_s30 = scalar_select %p103_p11, %s2467_s14, %s105_s28  }
  0x13   : > { %s190_s9 = sshra.s32 (!%p155_p10), %s2591_s8, 3  ;;  %p1559_p13 = scmp.eq.s32.totalorder (!%p155_p10), %s2471_s15, 0 }
  0x14   : > { %s1769_s24 = sshll.u32 (!%p155_p10), %s190_s9, 2 }
  0x16   : > { %v1781_v0 = vld [vmem:[%s2991_s1 + $0x14] sm:$0x7]  ;;  %vm282_vm0 = vcmask 1041408   ;;  %vm283_vm1 = vcmask 1042432   ;;  %v2489_v2 = vmov 65535   ;;  %s179_s20 = scalar_select %p178_p12, %s2475_s16, 1 }
  0x17   : > { %v262_v1 = vunpack.c.l.b16 %v1781_v0  ;;  %v284_v3 = vsel %vm282_vm0, 4294967295, %v2489_v2  ;;  %v188_v4 = vld [vmem:[%s2991_s1 + $0x8] sm:$0x7]  ;;  %v1902_v7 = vld [vmem:[%s2991_s1 + $0x20] sm:$0x7]  ;;  %v2247_v13 = vld [vmem:[%s2991_s1 + $0xc] sm:$0xff] }
  0x18   : > { %v2593_v5 = vsel %vm283_vm1, %v284_v3, 0  ;;  %v425_v6 = vunpack.c.l.b16 %v188_v4  ;;  %v586_v9 = vunpack.c.l.b16 %v1902_v7  ;;  %s2317_s21 = smul.u32 320, %s179_s20  ;;  %v2237_v15 = vld [vmem:[%s2991_s1] sm:$0xff]  ;;  %vm266_vm2 = vcmask 171008   ;;  %v2257_v21 = vld [vmem:[%s2991_s1 + $0x18] sm:$0xff]  ;;  %v2279_v34 = vld [vmem:[%s2991_s1 + $0x30] sm:$0xff] }
  0x19   : > { %v264_v8 = vpack.c.b16 %v262_v1, %v262_v1  ;;  %v2037_v22 = vld [vmem:[%s2991_s1 + $0x38] sm:$0x7]  ;;  %v1966_v39 = vld [vmem:[%s2991_s1 + $0x2c] sm:$0x7]  ;;  %v2269_v43 = vld [vmem:[%s2991_s1 + $0x24] sm:$0xff]  ;;  %vm1608_vm5 = vcmask 1040384  }
  0x1a   : > { %v427_v10 = vpack.c.b16 %v425_v6, %v425_v6  ;;  %s2608_s5 = scalar_lea.vmem %s2990_s0, %s2317_s21  ;;  %v588_v14 = vpack.c.b16 %v586_v9, %v586_v9  ;;  %v969_v23 = vunpack.c.l.b16 %v2037_v22  ;;  %v779_v40 = vunpack.c.l.b16 %v1966_v39  ;;  %v2098_v48 = vld [vmem:[%s2991_s1 + $0x44] sm:$0x7]  ;;  %v2169_v56 = vld [vmem:[%s2991_s1 + $0x50] sm:$0x7]  ;;  %v2289_v4 = vld [vmem:[%s2991_s1 + $0x3c] sm:$0xff] }
  0x1b   : > { %v287_v11 = vand.u32 %v2593_v5, %v264_v8  ;;  %s2614_s9 = scalar_lea.vmem %s2608_s5, %s1769_s24  ;;  %s2264_s24 = sadd.s32 16, %s2591_s8  ;;  %v1159_v49 = vunpack.c.l.b16 %v2098_v48  ;;  %v1349_v57 = vunpack.c.l.b16 %v2169_v56  ;;  %vm1637_vm6 = vcmask 130048  }
  0x1c   : > { %v445_v12 = vand.u32 %v427_v10, %v2593_v5  ;;  %v2248_v16 = vld [vmem:[%s2614_s9 + $0x50] sm:$0xff]  ;;  %v2255_v17 = vld [vmem:[%s2614_s9 + $0x100] sm:$0xff]  ;;  %v2244_v19 = vld [vmem:[%s2614_s9 + $0xa8] sm:$0xff]  ;;  %v606_v20 = vand.u32 %v588_v14, %v2593_v5  ;;  %v971_v24 = vpack.c.b16 %v969_v23, %v969_v23  ;;  %s644_s29 = sshra.s32 %s2264_s24, 3  ;;  %v781_v41 = vpack.c.b16 %v779_v40, %v779_v40  ;;  %s175_s24 = sand.u32 1, %s2463_s13  }
  0x1d   : > { %295 = vmatpush.bf16.msra.mxu0 %v287_v11  ;;  %2313 = vmatpush.bf16.msra.mxu1 %v287_v11  ;;  %v2238_v18 = vld [vmem:[%s2614_s9] sm:$0xff]  ;;  %v2249_v26 = vld [vmem:[%s2614_s9 + $0x58] sm:$0xff]  ;;  %v2256_v27 = vld [vmem:[%s2614_s9 + $0x108] sm:$0xff]  ;;  %s1943_s4 = sshll.u32 %s644_s29, 2  ;;  %v1161_v50 = vpack.c.b16 %v1159_v49, %v1159_v49  ;;  %v1351_v58 = vpack.c.b16 %v1349_v57, %v1349_v57  ;;  %s1765_s27 = sshll.u32 %s175_s24, 5 }
  0x1e   : > { %453 = vmatpush.bf16.msra.mxu2 %v445_v12  ;;  %2315 = vmatpush.bf16.msra.mxu3 %v445_v12  ;;  %v989_v25 = vand.u32 %v971_v24, %v2593_v5  ;;  %v2239_v28 = vld [vmem:[%s2614_s9 + $0x8] sm:$0xff]  ;;  %v2245_v29 = vld [vmem:[%s2614_s9 + $0xb0] sm:$0xff]  ;;  %v2250_v30 = vld [vmem:[%s2614_s9 + $0x60] sm:$0xff]  ;;  %s2653_s6 = scalar_lea.vmem %s2608_s5, %s1943_s4  ;;  %v799_v42 = vand.u32 %v781_v41, %v2593_v5  ;;  %s2903_s28 = scalar_lea.vmem [#allocation2], %s1765_s27 }
  0x1f   : > { %v2258_v31 = vld [vmem:[%s2614_s9 + $0xa0] sm:$0xff]  ;;  %v2240_v32 = vld [vmem:[%s2614_s9 + $0x10] sm:$0xff]  ;;  %v2246_v33 = vld [vmem:[%s2614_s9 + $0xb8] sm:$0xff]  ;;  %v1179_v55 = vand.u32 %v1161_v50, %v2593_v5  ;;  %v1369_v59 = vand.u32 %v1351_v58, %v2593_v5  ;;  %s2232_s29 = sshll.u32 %s2471_s15, 2  ;;  %s2233_s4 = sshll.u32 %s2475_s16, 3 }
  0x20   : > { %v2251_v35 = vld [vmem:[%s2614_s9 + $0x68] sm:$0xff]  ;;  %v2241_v37 = vld [vmem:[%s2614_s9 + $0x18] sm:$0xff]  ;;  %v2265_v38 = vld [vmem:[%s2653_s6] sm:$0xff]  ;;  %s1654_s7 = sadd.s32 %s2233_s4, %s2232_s29  ;;  %s2413_s29 = scalar_lea.hbm %s2993_s3, 128 }
  0x21   : > { %296 = vmatpush.bf16.msra.mxu0 %v2247_v13  ;;  %2314 = vmatpush.bf16.msra.mxu1 %v2247_v13  ;;  %v2259_v36 = vld [vmem:[%s2614_s9 + $0xa8] sm:$0xff]  ;;  %v2252_v44 = vld [vmem:[%s2614_s9 + $0x70] sm:$0xff]  ;;  %v2242_v46 = vld [vmem:[%s2614_s9 + $0x20] sm:$0xff]  ;;  %s2234_s10 = sshll.u32 %s1654_s7, 3 }
  0x22   : > { %454 = vmatpush.bf16.msra.mxu2 %v2237_v15  ;;  %2316 = vmatpush.bf16.msra.mxu3 %v2237_v15  ;;  %v2260_v45 = vld [vmem:[%s2614_s9 + $0xb0] sm:$0xff]  ;;  %v2266_v47 = vld [vmem:[%s2653_s6 + $0x8] sm:$0xff]  ;;  %v2261_v52 = vld [vmem:[%s2614_s9 + $0xb8] sm:$0xff]  ;;  %s1656_s16 = scalar_lea.hbm %s2993_s3, %s2234_s10 }
  0x23   : > { %v2253_v51 = vld [vmem:[%s2614_s9 + $0xf0] sm:$0xff]  ;;  %v2243_v53 = vld [vmem:[%s2614_s9 + $0xa0] sm:$0xff]  ;;  %v2254_v60 = vld [vmem:[%s2614_s9 + $0xf8] sm:$0xff] }
  0x24   : > { %1817 = vmatmul.msk.bf16.vlgmr.msra.gmra.mxu0 %vm266_vm2, %v2248_v16  ;;  %1849 = vmatmul.msk.bf16.vlgmr.msra.gmra.mxu1 %vm266_vm2, %v2255_v17  ;;  %v2267_v54 = vld [vmem:[%s2653_s6 + $0x10] sm:$0xff]  ;;  %v2262_v61 = vld [vmem:[%s2614_s9 + $0xc0] sm:$0xff]  ;;  %v2268_v62 = vld [vmem:[%s2653_s6 + $0x18] sm:$0xff] }
  0x25   : > { %372 = vmatpush.bf16.msrb.mxu0 %v287_v11  ;;  %1875 = vmatmul.msk.bf16.vlgmr.msra.gmra.mxu2 %vm266_vm2, %v2238_v18  ;;  %v2275_v63 = vld [vmem:[%s2653_s6 + $0x50] sm:$0xff]  ;;  %v2285_v1 = vld [vmem:[%s2653_s6 + $0xa0] sm:$0xff]  ;;  %v2276_v2 = vld [vmem:[%s2653_s6 + $0x58] sm:$0xff] }
  0x26   : > { %694 = vmatpush.bf16.msrb.mxu3 %v606_v20  ;;  %614 = vmatpush.bf16.msrb.mxu1 %v606_v20  ;;  %v2270_v0 = vld [vmem:[%s2614_s9 + $0xf0] sm:$0xff]  ;;  %v2280_v3 = vld [vmem:[%s2653_s6] sm:$0xff]  ;;  %v2299_v5 = vld [vmem:[%s2991_s1 + $0x48] sm:$0xff] }
  0x27   : > { %1897 = vmatmul.msk.bf16.vlgmr.msra.gmra.mxu3 %vm266_vm2, %v2244_v19  ;;  %519 = vmatpush.bf16.msrb.mxu2 %v445_v12  ;;  %v2271_v6 = vld [vmem:[%s2614_s9 + $0xf8] sm:$0xff]  ;;  %v2286_v7 = vld [vmem:[%s2653_s6 + $0xa8] sm:$0xff]  ;;  %v2277_v10 = vld [vmem:[%s2653_s6 + $0x60] sm:$0xff] }
  0x28   : > { %v2281_v11 = vld [vmem:[%s2653_s6 + $0x8] sm:$0xff]  ;;  %v2272_v19 = vld [vmem:[%s2614_s9 + $0x100] sm:$0xff]  ;;  %v2287_v20 = vld [vmem:[%s2653_s6 + $0xb0] sm:$0xff] }
  0x29   : > { %373 = vmatpush.bf16.msrb.mxu0 %v2247_v13  ;;  %v2278_v24 = vld [vmem:[%s2653_s6 + $0x68] sm:$0xff]  ;;  %v2283_v40 = vld [vmem:[%s2653_s6 + $0x18] sm:$0xff]  ;;  %v2290_v41 = vld [vmem:[%s2653_s6 + $0x50] sm:$0xff] }
  0x2a   : > { %695 = vmatpush.bf16.msrb.mxu3 %v2257_v21  ;;  %615 = vmatpush.bf16.msrb.mxu1 %v2257_v21  ;;  %v2284_v58 = vld [vmem:[%s2653_s6 + $0x20] sm:$0xff] }
  0x2b   : > { %520 = vmatpush.bf16.msrb.mxu2 %v2237_v15 }
  0x2d   : > { %807 = vmatpush.bf16.msra.mxu0 %v799_v42 }
  0x2e   : > { %1074 = vmatpush.bf16.msra.mxu1 %v989_v25  ;;  %997 = vmatpush.bf16.msra.mxu3 %v989_v25  ;;  %v2282_v25 = vld [vmem:[%s2653_s6 + $0x10] sm:$0xff] }
  0x2f   : > { %884 = vmatpush.bf16.msra.mxu2 %v799_v42 }
  0x31   : > { %808 = vmatpush.bf16.msra.mxu0 %v2269_v43 }
  0x32   : > { %1075 = vmatpush.bf16.msra.mxu1 %v2279_v34  ;;  %998 = vmatpush.bf16.msra.mxu3 %v2279_v34  ;;  %v2273_v34 = vld [vmem:[%s2614_s9 + $0x108] sm:$0xff] }
  0x33   : > { %885 = vmatpush.bf16.msra.mxu2 %v2269_v43 }
  0x34   : > { %1818 = vmatmul.msk.bf16.gmra.mxu0 %vm266_vm2, %v2249_v26  ;;  %1850 = vmatmul.msk.bf16.gmra.mxu1 %vm266_vm2, %v2256_v27 }
  0x35   : > { %1876 = vmatmul.msk.bf16.gmra.mxu2 %vm266_vm2, %v2239_v28 }
  0x37   : > { %1898 = vmatmul.msk.bf16.gmra.mxu3 %vm266_vm2, %v2245_v29 }
  0x44   : > { %1819 = vmatmul.msk.bf16.gmra.mxu0 %vm266_vm2, %v2250_v30  ;;  %1937 = vmatmul.msk.bf16.vlgmr.msrb.gmra.mxu1 %vm266_vm2, %v2258_v31 }
  0x45   : > { %1877 = vmatmul.msk.bf16.gmra.mxu2 %vm266_vm2, %v2240_v32  ;;  %1377 = vmatpush.bf16.msrb.mxu1 %v1369_v59 }
  0x47   : > { %1899 = vmatmul.msk.bf16.gmra.mxu3 %vm266_vm2, %v2246_v33 }
  0x49   : > { %1378 = vmatpush.bf16.msrb.mxu1 %v2299_v5 }
  0x54   : > { %1820 = vmatmul.msk.bf16.gmra.mxu0 %vm266_vm2, %v2251_v35  ;;  %1938 = vmatmul.msk.bf16.gmra.mxu1 %vm266_vm2, %v2259_v36  ;;  %v2288_v35 = vld [vmem:[%s2653_s6 + $0xb8] sm:$0xff] }
  0x55   : > { %1878 = vmatmul.msk.bf16.gmra.mxu2 %vm266_vm2, %v2241_v37 }
  0x57   : > { %1960 = vmatmul.msk.bf16.vlgmr.msrb.gmra.mxu3 %vm266_vm2, %v2265_v38 }
  0x58   : > { %1457 = vmatpush.bf16.msrb.mxu3 %v1369_v59  ;;  %v2291_v59 = vld [vmem:[%s2653_s6 + $0x58] sm:$0xff] }
  0x5c   : > { %1458 = vmatpush.bf16.msrb.mxu3 %v2299_v5  ;;  %v2295_v5 = vld [vmem:[%s2653_s6 + $0xf0] sm:$0xff] }
  0x64   : > { %1821 = vmatmul.msk.bf16.gmra.mxu0 %vm266_vm2, %v2252_v44  ;;  %1939 = vmatmul.msk.bf16.gmra.mxu1 %vm266_vm2, %v2260_v45 }
  0x65   : > { %1879 = vmatmul.msk.bf16.gmra.mxu2 %vm266_vm2, %v2242_v46 }
  0x67   : > { %1961 = vmatmul.msk.bf16.gmra.mxu3 %vm266_vm2, %v2266_v47 }
  0x74   : > { %1847 = vmatmul.msk.bf16.vlgmr.msrb.gmra.mxu0 %vm266_vm2, %v2253_v51  ;;  %1940 = vmatmul.msk.bf16.gmra.mxu1 %vm266_vm2, %v2261_v52  ;;  %v2274_v52 = vld [vmem:[%s2614_s9 + $0x110] sm:$0xff]  ;;  %s2306_s9 = sadd.s32 32, %s2591_s8 }
  0x75   : > { %1896 = vmatmul.msk.bf16.vlgmr.msrb.gmra.mxu2 %vm266_vm2, %v2243_v53  ;;  %1264 = vmatpush.bf16.msrb.mxu0 %v1179_v55  ;;  %v2300_v53 = vld [vmem:[%s2653_s6 + $0xa0] sm:$0xff]  ;;  %s1407_s11 = sshra.s32 %s2306_s9, 3 }
  0x76   : > { %1187 = vmatpush.bf16.msrb.mxu2 %v1179_v55  ;;  %s2210_s20 = sshll.u32 %s1407_s11, 2  ;;  %s1657_s11 = sshll.u32 %s2903_s28, 4  ;;  %s1658_s11 = int_to_ptr.vmem [resolvable:$true] %s1657_s11 }
  0x77   : > { %1962 = vmatmul.msk.bf16.gmra.mxu3 %vm266_vm2, %v2267_v54  ;;  %s2770_s21 = scalar_lea.vmem %s2608_s5, %s2210_s20  ;;  %s1659_s20 = sshll.u32 %s1656_s16, 4  ;;  %s1660_s20 = int_to_ptr.hbm [resolvable:$true] %s1659_s20 }
  0x78   : > { %s2407_s8 = sshra.s32 %s1660_s20, 4  ;;  %s2408_s8 = int_to_ptr.hbm [resolvable:$true] %s2407_s8 }
  0x79   : > { %1265 = vmatpush.bf16.msrb.mxu0 %v2289_v4  ;;  %s2409_s5 = scalar_lea.hbm %s2408_s8, 32  ;;  %p2414_p4 = scmp.lt.s32.totalorder %s2408_s8, %s2993_s3 }
  0x7a   : > { %1188 = vmatpush.bf16.msrb.mxu2 %v2289_v4  ;;  %p2410_p0 = scmp.ne.s32.totalorder %s2408_s8, %s2409_s5  ;;  %p2415_p5 = scmp.lt.s32.totalorder %s2413_s29, %s2409_s5 }
  0x7c   : > { %p2411_p1 = pnand %p2410_p0, %p2563_p3  ;;  %p2416_p6 = por %p2415_p5, %p2414_p4 }
  0x7e   : > { %p2412_p2 = pneg %p2411_p1 }
  0x80   : > { %p2417_p7 = pnand %p2416_p6, %p2412_p2 }
  0x84   : > { %1848 = vmatmul.msk.bf16.gmra.mxu0 %vm266_vm2, %v2254_v60  ;;  %1941 = vmatmul.msk.bf16.gmra.mxu1 %vm266_vm2, %v2262_v61 }
  0x85   : > { %2031 = vmatmul.msk.bf16.vlgmr.msra.gmra.mxu2 %vm266_vm2, %v2275_v63 }
  0x87   : > { %1963 = vmatmul.msk.bf16.gmra.mxu3 %vm266_vm2, %v2268_v62 }
  0x94   : > { %2001 = vmatmul.msk.bf16.vlgmr.msra.gmra.mxu0 %vm266_vm2, %v2270_v0  ;;  %2092 = vmatmul.msk.bf16.vlgmr.msra.gmra.mxu1 %vm266_vm2, %v2285_v1 }
  0x95   : > { %2032 = vmatmul.msk.bf16.gmra.mxu2 %vm266_vm2, %v2276_v2 }
  0x97   : > { %2062 = vmatmul.msk.bf16.vlgmr.msra.gmra.mxu3 %vm266_vm2, %v2280_v3 }
  0xa1   : > { %v298_v8 = vpop.f32.mrf.mxu0  ;;  %v385_v9 = vpop.f32.mrf.mxu1 }
  0xa4   : > { %2002 = vmatmul.msk.bf16.gmra.mxu0 %vm266_vm2, %v2271_v6  ;;  %2093 = vmatmul.msk.bf16.gmra.mxu1 %vm266_vm2, %v2286_v7  ;;  %v2301_v6 = vld [vmem:[%s2653_s6 + $0xa8] sm:$0xff] }
  0xa5   : > { %2033 = vmatmul.msk.bf16.gmra.mxu2 %vm266_vm2, %v2277_v10  ;;  %v2292_v10 = vld [vmem:[%s2653_s6 + $0x60] sm:$0xff] }
  0xa7   : > { %2063 = vmatmul.msk.bf16.gmra.mxu3 %vm266_vm2, %v2281_v11  ;;  %v2307_v11 = vld [vmem:[%s2770_s21] sm:$0xff] }
  0xa8   : > { %v456_v12 = vpop.f32.mrf.mxu2 }
  0xa9   : > { %v457_v14 = vadd.f32 %v456_v12, %v298_v8  ;;  %v300_v15 = vpop.f32.mrf.mxu0  ;;  %v387_v16 = vpop.f32.mrf.mxu1 }
  0xaa   : > { %v2724_v13 = vpop.f32.mrf.mxu3 }
  0xb0   : > { %v458_v17 = vpop.f32.mrf.mxu2 }
  0xb1   : > { %v459_v21 = vadd.f32 %v458_v17, %v300_v15  ;;  %v303_v22 = vpop.f32.mrf.mxu0  ;;  %v390_v23 = vpop.f32.mrf.mxu1 }
  0xb2   : > { %v2726_v18 = vpop.f32.mrf.mxu3 }
  0xb4   : > { %2003 = vmatmul.msk.bf16.gmra.mxu0 %vm266_vm2, %v2272_v19  ;;  %2094 = vmatmul.msk.bf16.gmra.mxu1 %vm266_vm2, %v2287_v20 }
  0xb5   : > { %2034 = vmatmul.msk.bf16.gmra.mxu2 %vm266_vm2, %v2278_v24  ;;  %v2302_v24 = vld [vmem:[%s2653_s6 + $0xb0] sm:$0xff] }
  0xb7   : > { %2064 = vmatmul.msk.bf16.gmra.mxu3 %vm266_vm2, %v2282_v25 }
  0xb8   : > { %v461_v26 = vpop.f32.mrf.mxu2 }
  0xb9   : > { %v462_v28 = vadd.f32 %v461_v26, %v303_v22  ;;  %v305_v30 = vpop.f32.mrf.mxu0  ;;  %v392_v31 = vpop.f32.mrf.mxu1 }
  0xba   : > { %v532_v27 = vpop.f32.mrf.mxu3 }
  0xbb   : > { %v2736_v29 = vadd.f32 %v532_v27, %v385_v9 }
  0xc0   : > { %v463_v32 = vpop.f32.mrf.mxu2 }
  0xc1   : > { %v464_v36 = vadd.f32 %v463_v32, %v305_v30  ;;  %v308_v38 = vpop.f32.mrf.mxu0  ;;  %v617_v39 = vpop.f32.mrf.mxu1  ;;  %v2308_v30 = vld [vmem:[%s2770_s21 + $0x8] sm:$0xff] }
  0xc2   : > { %v534_v33 = vpop.f32.mrf.mxu3  ;;  %v2744_v42 = vadd.f32 %v617_v39, %v457_v14 }
  0xc3   : > { %v2740_v37 = vadd.f32 %v534_v33, %v387_v16 }
  0xc4   : > { %2004 = vmatmul.msk.bf16.gmra.mxu0 %vm266_vm2, %v2273_v34  ;;  %2095 = vmatmul.msk.bf16.gmra.mxu1 %vm266_vm2, %v2288_v35 }
  0xc5   : > { %2133 = vmatmul.msk.bf16.vlgmr.msrb.gmra.mxu2 %vm266_vm2, %v2290_v41 }
  0xc7   : > { %2065 = vmatmul.msk.bf16.gmra.mxu3 %vm266_vm2, %v2283_v40 }
  0xc8   : > { %v466_v43 = vpop.f32.mrf.mxu2 }
  0xc9   : > { %v467_v45 = vadd.f32 %v466_v43, %v308_v38  ;;  %v310_v47 = vpop.f32.mrf.mxu0  ;;  %v619_v48 = vpop.f32.mrf.mxu1 }
  0xca   : > { %v537_v44 = vpop.f32.mrf.mxu3  ;;  %v2752_v49 = vadd.f32 %v619_v48, %v459_v21 }
  0xcb   : > { %v2750_v46 = vadd.f32 %v537_v44, %v390_v23  ;;  %v2296_v23 = vld [vmem:[%s2653_s6 + $0xf8] sm:$0xff]  ;;  %v2297_v44 = vld [vmem:[%s2653_s6 + $0x100] sm:$0xff] }
  0xd0   : > { %v468_v50 = vpop.f32.mrf.mxu2 }
  0xd1   : > { %v469_v54 = vadd.f32 %v468_v50, %v310_v47  ;;  %v313_v56 = vpop.f32.mrf.mxu0  ;;  %v622_v57 = vpop.f32.mrf.mxu1 }
  0xd2   : > { %v539_v51 = vpop.f32.mrf.mxu3  ;;  %v2760_v60 = vadd.f32 %v622_v57, %v462_v28  ;;  %v2293_v28 = vld [vmem:[%s2653_s6 + $0x68] sm:$0xff] }
  0xd3   : > { %v2756_v55 = vadd.f32 %v539_v51, %v392_v31 }
  0xd4   : > { %2005 = vmatmul.msk.bf16.gmra.mxu0 %vm266_vm2, %v2274_v52  ;;  %2204 = vmatmul.msk.bf16.vlgmr.msrb.gmra.mxu1 %vm266_vm2, %v2300_v53  ;;  %v2294_v52 = vld [vmem:[%s2653_s6 + $0x70] sm:$0xff] }
  0xd5   : > { %2134 = vmatmul.msk.bf16.gmra.mxu2 %vm266_vm2, %v2291_v59  ;;  %v2309_v53 = vld [vmem:[%s2770_s21 + $0x10] sm:$0xff] }
  0xd7   : > { %2066 = vmatmul.msk.bf16.gmra.mxu3 %vm266_vm2, %v2284_v58 }
  0xd8   : > { %v471_v61 = vpop.f32.mrf.mxu2 }
  0xd9   : > { %v472_v63 = vadd.f32 %v471_v61, %v313_v56  ;;  %v315_v0 = vpop.f32.mrf.mxu0  ;;  %v624_v1 = vpop.f32.mrf.mxu1 }
  0xda   : > { %v697_v62 = vpop.f32.mrf.mxu3  ;;  %v2767_v2 = vadd.f32 %v624_v1, %v464_v36 }
  0xe0   : > { %v473_v3 = vpop.f32.mrf.mxu2 }
  0xe1   : > { %v474_v7 = vadd.f32 %v473_v3, %v315_v0  ;;  %v318_v8 = vpop.f32.mrf.mxu0  ;;  %v627_v9 = vpop.f32.mrf.mxu1 }
  0xe2   : > { %v699_v4 = vpop.f32.mrf.mxu3  ;;  %v2776_v12 = vadd.f32 %v627_v9, %v467_v45  ;;  %v2303_v45 = vld [vmem:[%s2653_s6 + $0xb8] sm:$0xff] }
  0xe4   : > { %2163 = vmatmul.msk.bf16.vlgmr.msrb.gmra.mxu0 %vm266_vm2, %v2295_v5  ;;  %2205 = vmatmul.msk.bf16.gmra.mxu1 %vm266_vm2, %v2301_v6  ;;  %v2298_v5 = vld [vmem:[%s2653_s6 + $0x108] sm:$0xff]  ;;  %v2304_v6 = vld [vmem:[%s2653_s6 + $0xc0] sm:$0xff]  ;;  %s1560_s6 = scalar_select %p1559_p13, 1, 0 }
  0xe5   : > { %2135 = vmatmul.msk.bf16.gmra.mxu2 %vm266_vm2, %v2292_v10 }
  0xe7   : > { %2227 = vmatmul.msk.bf16.vlgmr.msrb.gmra.mxu3 %vm266_vm2, %v2307_v11  ;;  %v2310_v11 = vld [vmem:[%s2770_s21 + $0x18] sm:$0xff]  ;;  %s1643_s21 = scalar_lea.sflag [#allocation3], %s175_s24 }
  0xe8   : > { %v476_v14 = vpop.f32.mrf.mxu2 }
  0xe9   : > { %v477_v16 = vadd.f32 %v476_v14, %v318_v8  ;;  %v320_v17 = vpop.f32.mrf.mxu0  ;;  %v629_v19 = vpop.f32.mrf.mxu1 }
  0xea   : > { %v702_v15 = vpop.f32.mrf.mxu3  ;;  %v2782_v20 = vadd.f32 %v629_v19, %v469_v54 }
  0xf0   : > { %v478_v21 = vpop.f32.mrf.mxu2 }
  0xf1   : > { %v479_v25 = vadd.f32 %v478_v21, %v320_v17  ;;  %v375_v26 = vpop.f32.mrf.mxu0  ;;  %v632_v27 = vpop.f32.mrf.mxu1 }
  0xf2   : > { %v704_v22 = vpop.f32.mrf.mxu3  ;;  %v2788_v31 = vadd.f32 %v632_v27, %v472_v63 }
  0xf4   : > { %2164 = vmatmul.msk.bf16.gmra.mxu0 %vm266_vm2, %v2296_v23  ;;  %2206 = vmatmul.msk.bf16.gmra.mxu1 %vm266_vm2, %v2302_v24 }
  0xf5   : > { %2136 = vmatmul.msk.bf16.gmra.mxu2 %vm266_vm2, %v2293_v28 }
  0xf7   : > { %2228 = vmatmul.msk.bf16.gmra.mxu3 %vm266_vm2, %v2308_v30 }
  0xf8   : > { %v522_v32 = vpop.f32.mrf.mxu2 }
  0xf9   : > { %v523_v34 = vadd.f32 %v522_v32, %v375_v26  ;;  %v377_v36 = vpop.f32.mrf.mxu0  ;;  %v634_v38 = vpop.f32.mrf.mxu1 }
  0xfa   : > { %v707_v33 = vpop.f32.mrf.mxu3  ;;  %v2797_v39 = vadd.f32 %v634_v38, %v474_v7 }
  0xfb   : > { %v2795_v35 = vadd.f32 %v707_v33, %v2736_v29  ;;  %v727_v40 = vadd.f32 %v697_v62, %v523_v34 }
 0x100   : > { %v524_v41 = vpop.f32.mrf.mxu2 }
 0x101   : > { %v525_v47 = vadd.f32 %v524_v41, %v377_v36  ;;  %v380_v50 = vpop.f32.mrf.mxu0  ;;  %v637_v51 = vpop.f32.mrf.mxu1 }
 0x102   : > { %v709_v43 = vpop.f32.mrf.mxu3  ;;  %v528_v54 = vadd.f32 %v2724_v13, %v380_v50  ;;  %v2805_v29 = vadd.f32 %v637_v51, %v477_v16 }
 0x103   : > { %v732_v48 = vadd.f32 %v709_v43, %v2740_v37  ;;  %v728_v56 = vadd.f32 %v699_v4, %v525_v47 }
 0x104   : > { %2165 = vmatmul.msk.bf16.gmra.mxu0 %vm266_vm2, %v2297_v44  ;;  %2207 = vmatmul.msk.bf16.gmra.mxu1 %vm266_vm2, %v2303_v45  ;;  %v729_v57 = vadd.f32 %v702_v15, %v528_v54 }
 0x105   : > { %2137 = vmatmul.msk.bf16.gmra.mxu2 %vm266_vm2, %v2294_v52 }
 0x107   : > { %2229 = vmatmul.msk.bf16.gmra.mxu3 %vm266_vm2, %v2309_v53 }
 0x108   : > { %v887_v58 = vpop.f32.mrf.mxu2 }
 0x109   : > { %v917_v13 = vadd.f32 %v887_v58, %v727_v40  ;;  %v382_v61 = vpop.f32.mrf.mxu0  ;;  %v639_v62 = vpop.f32.mrf.mxu1 }
 0x10a   : > { %v712_v37 = vpop.f32.mrf.mxu3  ;;  %v530_v63 = vadd.f32 %v2726_v18, %v382_v61  ;;  %v2813_v0 = vadd.f32 %v639_v62, %v479_v25 }
 0x10b   : > { %v733_v59 = vadd.f32 %v712_v37, %v2750_v46 }
 0x10c   : > { %v730_v1 = vadd.f32 %v704_v22, %v530_v63 }
 0x110   : > { %v889_v4 = vpop.f32.mrf.mxu2 }
 0x111   : > { %v918_v8 = vadd.f32 %v889_v4, %v728_v56  ;;  %v810_v9 = vpop.f32.mrf.mxu0  ;;  %v1077_v10 = vpop.f32.mrf.mxu1 }
 0x112   : > { %v714_v3 = vpop.f32.mrf.mxu3  ;;  %v907_v46 = vadd.f32 %v810_v9, %v2744_v42  ;;  %v2820_v14 = vadd.f32 %v1077_v10, %v917_v13 }
 0x113   : > { %v734_v7 = vadd.f32 %v714_v3, %v2756_v55 }
 0x114   : > { %2166 = vmatmul.msk.bf16.gmra.mxu0 %vm266_vm2, %v2298_v5  ;;  %2208 = vmatmul.msk.bf16.gmra.mxu1 %vm266_vm2, %v2304_v6 }
 0x117   : > { %2230 = vmatmul.msk.bf16.gmra.mxu3 %vm266_vm2, %v2310_v11 }
 0x118   : > { %v892_v18 = vpop.f32.mrf.mxu2 }
 0x119   : > { %v919_v16 = vadd.f32 %v892_v18, %v729_v57  ;;  %v812_v19 = vpop.f32.mrf.mxu0  ;;  %v1079_v55 = vpop.f32.mrf.mxu1 }
 0x11a   : > { %v1000_v15 = vpop.f32.mrf.mxu3  ;;  %v908_v21 = vadd.f32 %v812_v19, %v2752_v49  ;;  %v2826_v22 = vadd.f32 %v1079_v55, %v918_v8  ;;  %v2865_v55 = vld [vmem:[%s2992_s2] ss:$0 sm:$0xff] }
 0x11b   : > { %v1097_v17 = vadd.f32 %v1000_v15, %v907_v46 }
 0x120   : > { %v894_v23 = vpop.f32.mrf.mxu2 }
 0x121   : > { %v920_v24 = vadd.f32 %v894_v23, %v730_v1  ;;  %v815_v26 = vpop.f32.mrf.mxu0  ;;  %v1082_v27 = vpop.f32.mrf.mxu1 }
 0x122   : > { %v1002_v42 = vpop.f32.mrf.mxu3  ;;  %v909_v28 = vadd.f32 %v815_v26, %v2760_v60  ;;  %v2829_v30 = vadd.f32 %v1082_v27, %v919_v16 }
 0x123   : > { %v1098_v25 = vadd.f32 %v1002_v42, %v908_v21 }
 0x128   : > { %v897_v32 = vpop.f32.mrf.mxu2 }
 0x129   : > { %v921_v34 = vadd.f32 %v897_v32, %v2795_v35  ;;  %v817_v38 = vpop.f32.mrf.mxu0  ;;  %v1084_v40 = vpop.f32.mrf.mxu1 }
 0x12a   : > { %v1005_v33 = vpop.f32.mrf.mxu3  ;;  %v2832_v49 = vadd.f32 %v1084_v40, %v920_v24  ;;  %v1561_v24 = vstv %s1560_s6 }
 0x12b   : > { %v1099_v36 = vadd.f32 %v1005_v33, %v909_v28  ;;  %vm2871_vm3 = vcmp.eq.s32.totalorder %v1561_v24, 1 }
 0x130   : > { %v899_v41 = vpop.f32.mrf.mxu2 }
 0x131   : > { %v922_v44 = vadd.f32 %v899_v41, %v732_v48  ;;  %v820_v45 = vpop.f32.mrf.mxu0  ;;  %v1087_v47 = vpop.f32.mrf.mxu1 }
 0x132   : > { %v1007_v43 = vpop.f32.mrf.mxu3  ;;  %v911_v50 = vadd.f32 %v820_v45, %v2776_v12  ;;  %v2835_v51 = vadd.f32 %v1087_v47, %v921_v34  ;;  %v910_v34 = vadd.f32 %v817_v38, %v2767_v2 }
 0x138   : > { %v902_v60 = vpop.f32.mrf.mxu2 }
 0x139   : > { %v923_v53 = vadd.f32 %v902_v60, %v733_v59  ;;  %v2839_v35 = vpop.f32.mrf.mxu0  ;;  %v1089_v56 = vpop.f32.mrf.mxu1 }
 0x13a   : > { %v1010_v52 = vpop.f32.mrf.mxu3  ;;  %v2841_v57 = vadd.f32 %v1089_v56, %v922_v44  ;;  %v1100_v44 = vadd.f32 %v1007_v43, %v910_v34 }
 0x13b   : > { %v2837_v54 = vadd.f32 %v1010_v52, %v911_v50 }
 0x140   : > { %v904_v37 = vpop.f32.mrf.mxu2 }
 0x141   : > { %v924_v48 = vadd.f32 %v904_v37, %v734_v7  ;;  %v825_v13 = vpop.f32.mrf.mxu0  ;;  %v1092_v61 = vpop.f32.mrf.mxu1 }
 0x142   : > { %v2843_v58 = vpop.f32.mrf.mxu3  ;;  %v913_v12 = vadd.f32 %v825_v13, %v2788_v31  ;;  %v2846_v62 = vadd.f32 %v1092_v61, %v923_v53 }
 0x148   : > { %v1190_v59 = vpop.f32.mrf.mxu2 }
 0x149   : > { %v2850_v3 = vpop.f32.mrf.mxu0  ;;  %v1094_v4 = vpop.f32.mrf.mxu1  ;;  %v1287_v46 = vadd.f32 %v1190_v59, %v1097_v17 }
 0x14a   : > { %v1015_v63 = vpop.f32.mrf.mxu3  ;;  %v2852_v5 = vadd.f32 %v1094_v4, %v924_v48 }
 0x14b   : > { %v2848_v1 = vadd.f32 %v1015_v63, %v913_v12 }
 0x150   : > { %v1192_v8 = vpop.f32.mrf.mxu2 }
 0x151   : > { %v830_v7 = vpop.f32.mrf.mxu0  ;;  %v1380_v9 = vpop.f32.mrf.mxu1  ;;  %v1288_v17 = vadd.f32 %v1192_v8, %v1098_v25 }
 0x152   : > { %v2854_v6 = vpop.f32.mrf.mxu3  ;;  %v915_v10 = vadd.f32 %v830_v7, %v2805_v29  ;;  %v1480_v19 = vadd.f32 %v1380_v9, %v1287_v46 }
 0x154   : > { %v1502_v21 = vadd.f32 %v2865_v55, %v1480_v19 }
 0x156   : > { %v1512_v32 = vmax.f32 %v1502_v21, 0.0  ;;  %v912_v21 = vadd.f32 %v2839_v35, %v2782_v20 }
 0x158   : > { %v1195_v11 = vpop.f32.mrf.mxu2  ;;  %v1573_v45 = vsel %vm2871_vm3, 0.0, %v1512_v32 }
 0x159   : > { %v2860_v15 = vpop.f32.mrf.mxu0  ;;  %v1382_v16 = vpop.f32.mrf.mxu1  ;;  %v1289_v23 = vadd.f32 %v1195_v11, %v1099_v36 }
 0x15a   : > { %v1020_v31 = vpop.f32.mrf.mxu3  ;;  %v1481_v33 = vadd.f32 %v1382_v16, %v1288_v17 }
 0x15b   : > { %v2858_v18 = vadd.f32 %v1020_v31, %v915_v10  ;;  %v1538_v10 = vlaneseq }
 0x15c   : > { %v1503_v25 = vadd.f32 %v2865_v55, %v1481_v33 }
 0x15e   : > { %v1513_v48 = vmax.f32 %v1503_v25, 0.0 }
 0x160   : > { %v1197_v42 = vpop.f32.mrf.mxu2  ;;  %v1574_v63 = vsel %vm2871_vm3, 0.0, %v1513_v48 }
 0x161   : > { %v1267_v26 = vpop.f32.mrf.mxu0  ;;  %v1385_v27 = vpop.f32.mrf.mxu1  ;;  %v1290_v50 = vadd.f32 %v1197_v42, %v1100_v44 }
 0x162   : > { %v2868_v29 = vpop.f32.mrf.mxu3  ;;  %v1482_v28 = vadd.f32 %v1385_v27, %v1289_v23  ;;  %v1297_v47 = vadd.f32 %v1267_v26, %v2820_v14  ;;  %v2889_v23 = vshrl.u32 %v1538_v10, 7 }
 0x164   : > { %v1504_v41 = vadd.f32 %v2865_v55, %v1482_v28  ;;  %vm1599_vm4 = vcmp.eq.s32.totalorder %v2889_v23, 0 }
 0x166   : > { %v1514_v36 = vmax.f32 %v1504_v41, 0.0 }
 0x168   : > { %v1583_v60 = vmax.f32 %v1573_v45, %v1514_v36  ;;  %v1200_v52 = vpop.f32.mrf.mxu2 }
 0x169   : > { %v1269_v38 = vpop.f32.mrf.mxu0  ;;  %v1387_v56 = vpop.f32.mrf.mxu1  ;;  %v1291_v4 = vadd.f32 %v1200_v52, %v2837_v54  ;;  %v1102_v54 = vadd.f32 %v2843_v58, %v912_v21 }
 0x16a   : > { %v1460_v53 = vpop.f32.mrf.mxu3  ;;  %v1483_v37 = vadd.f32 %v1387_v56, %v1290_v50  ;;  %v1298_v14 = vadd.f32 %v1269_v38, %v2826_v22 }
 0x16b   : > { %v1490_v2 = vadd.f32 %v1460_v53, %v1297_v47 }
 0x16c   : > { %v1505_v43 = vadd.f32 %v2865_v55, %v1483_v37 }
 0x16d   : > { %v1522_v13 = vadd.f32 %v2865_v55, %v1490_v2 }
 0x16e   : > { %v1515_v12 = vmax.f32 %v1505_v43, 0.0 }
 0x16f   : > { %v1530_v61 = vmax.f32 %v1522_v13, 0.0 }
 0x170   : > { %v1584_v8 = vmax.f32 %v1574_v63, %v1515_v12  ;;  %v1202_v7 = vpop.f32.mrf.mxu2 }
 0x171   : > { %v1591_v59 = vmax.f32 %v1583_v60, %v1530_v61  ;;  %v1272_v11 = vpop.f32.mrf.mxu0  ;;  %v1390_v46 = vpop.f32.mrf.mxu1  ;;  %v1292_v27 = vadd.f32 %v1202_v7, %v1102_v54 }
 0x172   : > { %v1462_v9 = vpop.f32.mrf.mxu3  ;;  %v1484_v16 = vadd.f32 %v1390_v46, %v1291_v4  ;;  %v1299_v26 = vadd.f32 %v1272_v11, %v2829_v30 }
 0x173   : > { %v1491_v31 = vadd.f32 %v1462_v9, %v1298_v14  ;;  %v1609_v35 = vrot.slane %v1591_v59, 7 }
 0x174   : > { %v1506_v22 = vadd.f32 %v2865_v55, %v1484_v16 }
 0x175   : > { %v1523_v19 = vadd.f32 %v2865_v55, %v1491_v31 }
 0x176   : > { %v1516_v17 = vmax.f32 %v1506_v22, 0.0 }
 0x177   : > { %v1531_v42 = vmax.f32 %v1523_v19, 0.0 }
 0x178   : > { %v1585_v28 = vmax.f32 %v1514_v36, %v1516_v17  ;;  %v1205_v32 = vpop.f32.mrf.mxu2 }
 0x179   : > { %v1592_v24 = vmax.f32 %v1584_v8, %v1531_v42  ;;  %v1274_v41 = vpop.f32.mrf.mxu0  ;;  %v1392_v58 = vpop.f32.mrf.mxu1  ;;  %v1293_v2 = vadd.f32 %v1205_v32, %v2848_v1 }
 0x17a   : > { %v1465_v20 = vpop.f32.mrf.mxu3  ;;  %v1485_v44 = vadd.f32 %v1392_v58, %v1292_v27  ;;  %v1300_v53 = vadd.f32 %v1274_v41, %v2832_v49  ;;  %v916_v58 = vadd.f32 %v2860_v15, %v2813_v0 }
 0x17b   : > { %v1610_v33 = vrot.slane %v1592_v24, 7  ;;  %v1629_v34 = vmax.f32 %v1591_v59, %v1592_v24  ;;  %v1492_v40 = vadd.f32 %v1465_v20, %v1299_v26  ;;  %v914_v59 = vadd.f32 %v2850_v3, %v2797_v39 }
 0x17c   : > { %v1507_v36 = vadd.f32 %v2865_v55, %v1485_v44 }
 0x17d   : > { %v1611_v45 = vsel %vm1608_vm5, %v1609_v35, %v1610_v33  ;;  %v1524_v30 = vadd.f32 %v2865_v55, %v1492_v40  ;;  %v1104_v8 = vadd.f32 %v2854_v6, %v914_v59 }
 0x17e   : > { %v1625_v25 = vsel %vm1599_vm4, 0.0, %v1611_v45  ;;  %v1517_v60 = vmax.f32 %v1507_v36, 0.0 }
 0x17f   : > { %v1633_v47 = vmax.f32 %v1629_v34, %v1625_v25  ;;  %v1532_v50 = vmax.f32 %v1524_v30, 0.0  ;;  %v1106_v25 = vadd.f32 %v2868_v29, %v916_v58 }
 0x180   : > { %v1586_v38 = vmax.f32 %v1515_v12, %v1517_v60  ;;  %v1207_v56 = vpop.f32.mrf.mxu2 }
 0x181   : > { %1638 = vst.msk [vmem:[%s2903_s28] sm:$0xff] %vm1637_vm6, %v1633_v47  ;;  %v1593_v52 = vmax.f32 %v1585_v28, %v1532_v50  ;;  %v1277_v13 = vpop.f32.mrf.mxu0  ;;  %v1395_v43 = vpop.f32.mrf.mxu1  ;;  %v1294_v12 = vadd.f32 %v1207_v56, %v1104_v8 }
 0x182   : > { %v1467_v37 = vpop.f32.mrf.mxu3  ;;  %v1486_v61 = vadd.f32 %v1395_v43, %v1293_v2  ;;  %v1301_v1 = vadd.f32 %v1277_v13, %v2835_v51 }
 0x183   : > { %v1493_v48 = vadd.f32 %v1467_v37, %v1300_v53  ;;  %v1612_v31 = vrot.slane %v1593_v52, 7 }
 0x184   : > { %v1508_v14 = vadd.f32 %v2865_v55, %v1486_v61 }
 0x185   : > { %v1525_v63 = vadd.f32 %v2865_v55, %v1493_v48 }
 0x186   : > { %v1518_v49 = vmax.f32 %v1508_v14, 0.0 }
 0x187   : > { %v1533_v4 = vmax.f32 %v1525_v63, 0.0 }
 0x188   : > { %v1587_v9 = vmax.f32 %v1516_v17, %v1518_v49  ;;  %v1210_v22 = vpop.f32.mrf.mxu2 }
 0x189   : > { %v1594_v7 = vmax.f32 %v1586_v38, %v1533_v4  ;;  %v1279_v19 = vpop.f32.mrf.mxu0  ;;  %v1397_v21 = vpop.f32.mrf.mxu1  ;;  %v1295_v28 = vadd.f32 %v1210_v22, %v2858_v18 }
 0x18a   : > { %v1470_v10 = vpop.f32.mrf.mxu3  ;;  %v1487_v39 = vadd.f32 %v1397_v21, %v1294_v12  ;;  %v1302_v27 = vadd.f32 %v1279_v19, %v2841_v57 }
 0x18b   : > { %v1613_v11 = vrot.slane %v1594_v7, 7  ;;  %v1630_v46 = vmax.f32 %v1593_v52, %v1594_v7  ;;  %v1494_v16 = vadd.f32 %v1470_v10, %v1301_v1 }
 0x18c   : > { %v1509_v51 = vadd.f32 %v2865_v55, %v1487_v39 }
 0x18d   : > { %v1614_v3 = vsel %vm1608_vm5, %v1612_v31, %v1613_v11  ;;  %v1526_v6 = vadd.f32 %v2865_v55, %v1494_v16 }
 0x18e   : > { %v1626_v42 = vsel %vm1599_vm4, 0.0, %v1614_v3  ;;  %v1519_v24 = vmax.f32 %v1509_v51, 0.0 }
 0x18f   : > { %v1634_v54 = vmax.f32 %v1630_v46, %v1626_v42  ;;  %v1534_v17 = vmax.f32 %v1526_v6, 0.0 }
 0x190   : > { %v1588_v32 = vmax.f32 %v1517_v60, %v1519_v24  ;;  %v1212_v45 = vpop.f32.mrf.mxu2 }
 0x191   : > { %1639 = vst.msk [vmem:[%s2903_s28 + $0x8] sm:$0xff] %vm1637_vm6, %v1634_v54  ;;  %v1595_v26 = vmax.f32 %v1587_v9, %v1534_v17  ;;  %v1400_v33 = vpop.f32.mrf.mxu1  ;;  %v1282_v34 = vpop.f32.mrf.mxu0  ;;  %v1296_v47 = vadd.f32 %v1212_v45, %v1106_v25 }
 0x192   : > { %v1472_v20 = vpop.f32.mrf.mxu3  ;;  %v1488_v40 = vadd.f32 %v1400_v33, %v1295_v28  ;;  %v1303_v18 = vadd.f32 %v1282_v34, %v2846_v62 }
 0x193   : > { %v1495_v35 = vadd.f32 %v1472_v20, %v1302_v27  ;;  %v1615_v52 = vrot.slane %v1595_v26, 7 }
 0x194   : > { %v1510_v44 = vadd.f32 %v2865_v55, %v1488_v40 }
 0x195   : > { %v1527_v41 = vadd.f32 %v2865_v55, %v1495_v35 }
 0x196   : > { %v1520_v57 = vmax.f32 %v1510_v44, 0.0 }
 0x197   : > { %v1535_v30 = vmax.f32 %v1527_v41, 0.0 }
 0x198   : > { %v1589_v50 = vmax.f32 %v1518_v49, %v1520_v57 }
 0x199   : > { %v1596_v36 = vmax.f32 %v1588_v32, %v1535_v30  ;;  %v1402_v15 = vpop.f32.mrf.mxu1  ;;  %v1284_v62 = vpop.f32.mrf.mxu0 }
 0x19a   : > { %v1475_v60 = vpop.f32.mrf.mxu3  ;;  %v1489_v38 = vadd.f32 %v1402_v15, %v1296_v47  ;;  %v1304_v59 = vadd.f32 %v1284_v62, %v2852_v5 }
 0x19b   : > { %v1616_v53 = vrot.slane %v1596_v36, 7  ;;  %v1631_v2 = vmax.f32 %v1595_v26, %v1596_v36  ;;  %v1496_v0 = vadd.f32 %v1475_v60, %v1303_v18 }
 0x19c   : > { %v1511_v48 = vadd.f32 %v2865_v55, %v1489_v38 }
 0x19d   : > { %v1617_v56 = vsel %vm1608_vm5, %v1615_v52, %v1616_v53  ;;  %v1528_v29 = vadd.f32 %v2865_v55, %v1496_v0 }
 0x19e   : > { %v1627_v37 = vsel %vm1599_vm4, 0.0, %v1617_v56  ;;  %v1521_v61 = vmax.f32 %v1511_v48, 0.0 }
 0x19f   : > { %v1635_v13 = vmax.f32 %v1631_v2, %v1627_v37  ;;  %v1536_v43 = vmax.f32 %v1528_v29, 0.0 }
 0x1a0   : > { %v1590_v14 = vmax.f32 %v1519_v24, %v1521_v61 }
 0x1a1   : > { %1640 = vst.msk [vmem:[%s2903_s28 + $0x10] sm:$0xff] %vm1637_vm6, %v1635_v13  ;;  %v1597_v63 = vmax.f32 %v1589_v50, %v1536_v43 }
 0x1a2   : > { %v1477_v4 = vpop.f32.mrf.mxu3 }
 0x1a3   : > { %v1497_v8 = vadd.f32 %v1477_v4, %v1304_v59  ;;  %v1618_v12 = vrot.slane %v1597_v63, 7 }
 0x1a5   : > { %v1529_v49 = vadd.f32 %v2865_v55, %v1497_v8 }
 0x1a7   : > { %v1537_v7 = vmax.f32 %v1529_v49, 0.0 }
 0x1a9   : > { %v1598_v1 = vmax.f32 %v1590_v14, %v1537_v7 }
 0x1ab   : > { %v1619_v9 = vrot.slane %v1598_v1, 7  ;;  %v1632_v10 = vmax.f32 %v1597_v63, %v1598_v1 }
 0x1ad   : > { %v1620_v5 = vsel %vm1608_vm5, %v1618_v12, %v1619_v9 }
 0x1ae   : > { %v1628_v31 = vsel %vm1599_vm4, 0.0, %v1620_v5 }
 0x1af   : > { %v1636_v55 = vmax.f32 %v1632_v10, %v1628_v31 }
 0x1b1   : > { %1641 = vst.msk [vmem:[%s2903_s28 + $0x18] sm:$0xff] %vm1637_vm6, %v1636_v55 }
 0x1b2   : > { %2420 = shalt.err (!%p2417_p7)
}
 0x1b3   : > { %s2490_s24 = smov 128   ;;  %s2491_s28 = smov 8  }
 0x1b4   : > { %2318 = dma.vmem_to_hbm [thread:$0]  (%p2563_p3), %s1658_s11, 512, %s1660_s20, %s1643_s21, %s2490_s24, %s2490_s24, %s2491_s28  }
 0x1b5 PF: > { %p2324_p9 = scmp.ge.s32.totalorder %s2487_s19, 2  ;;  %s1674_s10 = sand.u32 1, %s2459_s12  }
 0x1b6   : > { %s1675_s9 = scalar_lea.sflag [#allocation3], %s1674_s10 }
 0x1b7   : > { %p2321_p10 = pnand %p2324_p9, %p2572_p8 }
 0x1b9   : > { %p2322_p11 = pneg %p2321_p10 }
 0x1bb   : > { %2454 = dma.done.wait (%p2322_p11), %s1675_s9, 512  }
 0x1bc   : > { %2456 = vsyncadd (%p2322_p11), %s1675_s9, 4294966784  ;;  %s16_s19 = sadd.s32 1, %s2487_s19   ;;  %s2998_s12 = smov %s2463_s13 }
 0x1bd   : > { %p13_p12 = scmp.ge.s32.totalorder %s16_s19, 6   ;;  %s2999_s13 = smov %s2467_s14 }
 0x1be   : > { %s3000_s14 = smov %s2581_s30  ;;  %s3001_s15 = smov %s2479_s17 }
 0x1bf   : > { %s3002_s16 = smov %s2483_s18  ;;  %s3003_s17 = smov %s3006_s22 }
 0x1c0   : > { %s3004_s18 = smov %s3010_s23  ;;  %15 = sbr.rel (!%p13_p12) target bundleno = 5 (0x5), region = 82 }
 0x1c5   :  { %1681 = vsyncpa [#allocation3], 1 }
 0x1c6   :  { %1683 = vsyncpa [#allocation3 + $0x1], 1 }

</bundles_post_ra>
